<compile_context>
chip_gen: v6e
topology: v6e:2x2x1
jax: 0.10.0
libtpu: 0.0.40
codegen_flags: <defaults>
</compile_context>

<pallas_src>
import functools

import jax
import jax.numpy as jnp
from jax.experimental import pallas as pl
from jax.experimental.pallas import tpu as pltpu

INPUT_SIZE = 5
LAYER_SIZES = [INPUT_SIZE, 96, 48, 24, 12, 1]
F_PAD = 8          # input feature dim padded to a full sublane group
LANES = 128        # TPU lane width


def mlp_kernel(x_ref,
               w1_ref, b1_ref,
               w2_ref, b2_ref,
               w3_ref, b3_ref,
               w4_ref, b4_ref,
               w5_ref, b5_ref,
               out_ref, *, compute_dtype):
    # Feature-major: activations are [feat, TB]; each layer is W @ h + b with
    # N = TB (lane dense) and tiny M/K on the MXU.  tanh precedes every layer.
    # MXU accumulation is f32; tanh runs in `compute_dtype` (bf16 on v6e/v7x).
    h = jnp.tanh(x_ref[...])                                                  # [8,  TB]
    z = jnp.dot(w1_ref[...], h, preferred_element_type=jnp.float32) + b1_ref[...]
    h = jnp.tanh(z.astype(compute_dtype))                                     # [96, TB]
    z = jnp.dot(w2_ref[...], h, preferred_element_type=jnp.float32) + b2_ref[...]
    h = jnp.tanh(z.astype(compute_dtype))                                     # [48, TB]
    z = jnp.dot(w3_ref[...], h, preferred_element_type=jnp.float32) + b3_ref[...]
    h = jnp.tanh(z.astype(compute_dtype))                                     # [24, TB]
    z = jnp.dot(w4_ref[...], h, preferred_element_type=jnp.float32) + b4_ref[...]
    h = jnp.tanh(z.astype(compute_dtype))                                     # [12, TB]
    z = jnp.dot(w5_ref[...], h, preferred_element_type=jnp.float32) + b5_ref[...]
    out_ref[...] = jax.nn.sigmoid(z)                                          # [1,  TB] f32


def _batch_dim_semantics(num_steps):
    """CORE_PARALLEL only on v7-class chips (2 TCs) with >=2 grid steps."""
    kind = ""
    try:
        kind = jax.devices()[0].device_kind.lower()
    except Exception:
        pass
    if "v7" in kind and num_steps >= 2:
        return (pltpu.CORE_PARALLEL,)
    return ("parallel",)


def net_forward_pallas(x, params, *, tb=2048, compute_dtype=jnp.bfloat16):
    """x: [B, INPUT_SIZE] f32.  params: list of (W [out,in], b [out,1]) f32.

    Returns [B, 1] f32 (matches PyTorch Net.forward)."""
    B, F = x.shape
    assert F == INPUT_SIZE

    # Pad batch up to a multiple of the lane width, clamp the tile to that,
    # then make the padded batch a multiple of the tile.
    b_pad = ((B + LANES - 1) // LANES) * LANES
    tb = min(tb, b_pad)
    b_pad = ((b_pad + tb - 1) // tb) * tb
    num_steps = b_pad // tb

    # Single fused transpose+pad: [B, 5] -> [8, b_pad], batch on lanes.
    # Cast to compute dtype so the per-step x DMA is half-width in bf16.
    xt = jnp.pad(x.T, ((0, F_PAD - F), (0, b_pad - B))).astype(compute_dtype)

    # First-layer weight gets zero columns for the padded input rows, so the
    # padded rows are exactly inert regardless of their contents.
    w1, b1 = params[0]
    w1p = jnp.pad(w1, ((0, 0), (0, F_PAD - w1.shape[1])))
    flat = []
    for w, b in [(w1p, b1)] + list(params[1:]):
        flat.append(w.astype(compute_dtype))      # bf16 weights for the MXU
        flat.append(b.astype(jnp.float32))        # f32 bias added post-acc

    def resident(a):
        # Full-extent block with a constant index_map -> stays VMEM-resident
        # across all grid steps (weights + biases total ~14 KB in bf16).
        return pl.BlockSpec(a.shape, lambda i: (0, 0))

    in_specs = [pl.BlockSpec((F_PAD, tb), lambda i: (0, i))]
    in_specs += [resident(a) for a in flat]
    out_spec = pl.BlockSpec((1, tb), lambda i: (0, i))

    out_t = pl.pallas_call(
        functools.partial(mlp_kernel, compute_dtype=compute_dtype),
        out_shape=jax.ShapeDtypeStruct((1, b_pad), jnp.float32),
        grid=(num_steps,),
        in_specs=in_specs,
        out_specs=out_spec,
        compiler_params=pltpu.CompilerParams(
            dimension_semantics=_batch_dim_semantics(num_steps)),
    )(xt, *flat)

    # Back to the PyTorch-facing layout.
    return out_t[:, :B].T                                                     # [B, 1]


def net_forward(x, params, *, tb=2048, compute_dtype=jnp.bfloat16,
                min_pallas_batch=1024):
    """Dispatcher: tiny batches go to plain XLA (a 1-step grid would be
    dominated by launch + pad overhead), larger batches to the Pallas kernel."""
    if x.shape[0] < min_pallas_batch:
        return reference_forward(x, params)
    return net_forward_pallas(x, params, tb=tb, compute_dtype=compute_dtype)


def init_params(key):
    """PyTorch nn.Linear-style init; W stored [out_features, in_features]."""
    params = []
    for i in range(len(LAYER_SIZES) - 1):
        fan_in, fan_out = LAYER_SIZES[i], LAYER_SIZES[i + 1]
        key, kw, kb = jax.random.split(key, 3)
        bound = 1.0 / jnp.sqrt(fan_in)
        w = jax.random.uniform(kw, (fan_out, fan_in), jnp.float32,
                               minval=-bound, maxval=bound)
        b = jax.random.uniform(kb, (fan_out, 1), jnp.float32,
                               minval=-bound, maxval=bound)
        params.append((w, b))
    return params


def reference_forward(x, params):
    """Pure-JAX reference in standard batch-major layout."""
    h = x
    for w, b in params:
        h = jnp.tanh(h) @ w.T + b.T
    return jax.nn.sigmoid(h)


if __name__ == "__main__":
    key = jax.random.PRNGKey(0)
    key, kx = jax.random.split(key)

    batch = 8
    x = jax.random.normal(kx, (batch, INPUT_SIZE), dtype=jnp.float32)
    params = init_params(key)

    ref = reference_forward(x, params)

    # Exercise the Pallas kernel directly (the `net_forward` dispatcher would
    # route a batch this small to the plain-XLA fallback).
    out_f32 = jax.block_until_ready(
        net_forward_pallas(x, params, compute_dtype=jnp.float32))
    assert out_f32.shape == (batch, 1)
    assert jnp.allclose(out_f32, ref, atol=1e-5, rtol=1e-5)

    out_bf16 = jax.block_until_ready(
        net_forward_pallas(x, params, compute_dtype=jnp.bfloat16))
    assert out_bf16.shape == (batch, 1)
    assert jnp.allclose(out_bf16, ref, atol=3e-2, rtol=0.0)

    print("KERNEL_OK")
</pallas_src>

<mosaic_0001>
module attributes {stable_mosaic.version = 11 : i64} {
  func.func @mlp_kernel(%arg0: i32, %arg1: memref<8x128xf32, #tpu.memory_space<vmem>>, %arg2: memref<96x8xf32, #tpu.memory_space<vmem>>, %arg3: memref<96x1xf32, #tpu.memory_space<vmem>>, %arg4: memref<48x96xf32, #tpu.memory_space<vmem>>, %arg5: memref<48x1xf32, #tpu.memory_space<vmem>>, %arg6: memref<24x48xf32, #tpu.memory_space<vmem>>, %arg7: memref<24x1xf32, #tpu.memory_space<vmem>>, %arg8: memref<12x24xf32, #tpu.memory_space<vmem>>, %arg9: memref<12x1xf32, #tpu.memory_space<vmem>>, %arg10: memref<1x12xf32, #tpu.memory_space<vmem>>, %arg11: memref<1x1xf32, #tpu.memory_space<vmem>>, %arg12: memref<1x128xf32, #tpu.memory_space<vmem>>) attributes {dimension_semantics = [#tpu.dimension_semantics<parallel>], iteration_bounds = array<i64: 1>, scalar_prefetch = 0 : i64, scratch_operands = 0 : i64, tpu.core_type = #tpu.core_type<tc>, window_params = [{transform_indices = @transform_0, window_bounds = array<i64: 8, 128>}, {pipeline_mode = #tpu.pipeline_mode<synchronous>, transform_indices = @transform_1, window_bounds = array<i64: 96, 8>}, {pipeline_mode = #tpu.pipeline_mode<synchronous>, transform_indices = @transform_2, window_bounds = array<i64: 96, 1>}, {pipeline_mode = #tpu.pipeline_mode<synchronous>, transform_indices = @transform_3, window_bounds = array<i64: 48, 96>}, {pipeline_mode = #tpu.pipeline_mode<synchronous>, transform_indices = @transform_4, window_bounds = array<i64: 48, 1>}, {pipeline_mode = #tpu.pipeline_mode<synchronous>, transform_indices = @transform_5, window_bounds = array<i64: 24, 48>}, {pipeline_mode = #tpu.pipeline_mode<synchronous>, transform_indices = @transform_6, window_bounds = array<i64: 24, 1>}, {pipeline_mode = #tpu.pipeline_mode<synchronous>, transform_indices = @transform_7, window_bounds = array<i64: 12, 24>}, {pipeline_mode = #tpu.pipeline_mode<synchronous>, transform_indices = @transform_8, window_bounds = array<i64: 12, 1>}, {pipeline_mode = #tpu.pipeline_mode<synchronous>, transform_indices = @transform_9, window_bounds = array<i64: 1, 12>}, {pipeline_mode = #tpu.pipeline_mode<synchronous>, transform_indices = @transform_10, window_bounds = array<i64: 1, 1>}, {transform_indices = @transform_11, window_bounds = array<i64: 1, 128>}]} {
    %c0 = arith.constant 0 : index
    %c0_0 = arith.constant 0 : index
    %0 = vector.load %arg1[%c0, %c0_0] : memref<8x128xf32, #tpu.memory_space<vmem>>, vector<8x128xf32>
    %1 = math.tanh %0 : vector<8x128xf32>
    %c0_1 = arith.constant 0 : index
    %c0_2 = arith.constant 0 : index
    %2 = vector.load %arg2[%c0_1, %c0_2] : memref<96x8xf32, #tpu.memory_space<vmem>>, vector<96x8xf32>
    %cst = arith.constant dense<0.000000e+00> : vector<96x128xf32>
    %3 = tpu.matmul %2, %1, %cst {dimension_numbers = #tpu.dot_dimension_numbers<[1], [0], [0], [1], [0, 0, 1, 1], [], []>} : vector<96x8xf32>, vector<8x128xf32>, vector<96x128xf32> -> vector<96x128xf32>
    %c0_3 = arith.constant 0 : index
    %c0_4 = arith.constant 0 : index
    %4 = vector.load %arg3[%c0_3, %c0_4] : memref<96x1xf32, #tpu.memory_space<vmem>>, vector<96x1xf32>
    %5 = vector.broadcast %4 : vector<96x1xf32> to vector<96x128xf32>
    %6 = arith.addf %3, %5 : vector<96x128xf32>
    %7 = math.tanh %6 : vector<96x128xf32>
    %c0_5 = arith.constant 0 : index
    %c0_6 = arith.constant 0 : index
    %8 = vector.load %arg4[%c0_5, %c0_6] : memref<48x96xf32, #tpu.memory_space<vmem>>, vector<48x96xf32>
    %cst_7 = arith.constant dense<0.000000e+00> : vector<48x128xf32>
    %9 = tpu.matmul %8, %7, %cst_7 {dimension_numbers = #tpu.dot_dimension_numbers<[1], [0], [0], [1], [0, 0, 1, 1], [], []>} : vector<48x96xf32>, vector<96x128xf32>, vector<48x128xf32> -> vector<48x128xf32>
    %c0_8 = arith.constant 0 : index
    %c0_9 = arith.constant 0 : index
    %10 = vector.load %arg5[%c0_8, %c0_9] : memref<48x1xf32, #tpu.memory_space<vmem>>, vector<48x1xf32>
    %11 = vector.broadcast %10 : vector<48x1xf32> to vector<48x128xf32>
    %12 = arith.addf %9, %11 : vector<48x128xf32>
    %13 = math.tanh %12 : vector<48x128xf32>
    %c0_10 = arith.constant 0 : index
    %c0_11 = arith.constant 0 : index
    %14 = vector.load %arg6[%c0_10, %c0_11] : memref<24x48xf32, #tpu.memory_space<vmem>>, vector<24x48xf32>
    %cst_12 = arith.constant dense<0.000000e+00> : vector<24x128xf32>
    %15 = tpu.matmul %14, %13, %cst_12 {dimension_numbers = #tpu.dot_dimension_numbers<[1], [0], [0], [1], [0, 0, 1, 1], [], []>} : vector<24x48xf32>, vector<48x128xf32>, vector<24x128xf32> -> vector<24x128xf32>
    %c0_13 = arith.constant 0 : index
    %c0_14 = arith.constant 0 : index
    %16 = vector.load %arg7[%c0_13, %c0_14] : memref<24x1xf32, #tpu.memory_space<vmem>>, vector<24x1xf32>
    %17 = vector.broadcast %16 : vector<24x1xf32> to vector<24x128xf32>
    %18 = arith.addf %15, %17 : vector<24x128xf32>
    %19 = math.tanh %18 : vector<24x128xf32>
    %c0_15 = arith.constant 0 : index
    %c0_16 = arith.constant 0 : index
    %20 = vector.load %arg8[%c0_15, %c0_16] : memref<12x24xf32, #tpu.memory_space<vmem>>, vector<12x24xf32>
    %cst_17 = arith.constant dense<0.000000e+00> : vector<12x128xf32>
    %21 = tpu.matmul %20, %19, %cst_17 {dimension_numbers = #tpu.dot_dimension_numbers<[1], [0], [0], [1], [0, 0, 1, 1], [], []>} : vector<12x24xf32>, vector<24x128xf32>, vector<12x128xf32> -> vector<12x128xf32>
    %c0_18 = arith.constant 0 : index
    %c0_19 = arith.constant 0 : index
    %22 = vector.load %arg9[%c0_18, %c0_19] : memref<12x1xf32, #tpu.memory_space<vmem>>, vector<12x1xf32>
    %23 = vector.broadcast %22 : vector<12x1xf32> to vector<12x128xf32>
    %24 = arith.addf %21, %23 : vector<12x128xf32>
    %25 = math.tanh %24 : vector<12x128xf32>
    %c0_20 = arith.constant 0 : index
    %c0_21 = arith.constant 0 : index
    %26 = vector.load %arg10[%c0_20, %c0_21] : memref<1x12xf32, #tpu.memory_space<vmem>>, vector<1x12xf32>
    %cst_22 = arith.constant dense<0.000000e+00> : vector<1x128xf32>
    %27 = tpu.matmul %26, %25, %cst_22 {dimension_numbers = #tpu.dot_dimension_numbers<[1], [0], [0], [1], [0, 0, 1, 1], [], []>} : vector<1x12xf32>, vector<12x128xf32>, vector<1x128xf32> -> vector<1x128xf32>
    %c0_23 = arith.constant 0 : index
    %c0_24 = arith.constant 0 : index
    %28 = vector.load %arg11[%c0_23, %c0_24] : memref<1x1xf32, #tpu.memory_space<vmem>>, vector<1x1xf32>
    %29 = vector.broadcast %28 : vector<1x1xf32> to vector<1x128xf32>
    %30 = arith.addf %27, %29 : vector<1x128xf32>
    %31 = arith.negf %30 : vector<1x128xf32>
    %32 = math.exp %31 : vector<1x128xf32>
    %cst_25 = arith.constant 1.000000e+00 : f32
    %33 = vector.broadcast %cst_25 : f32 to vector<1x128xf32>
    %34 = arith.addf %33, %32 : vector<1x128xf32>
    %35 = arith.divf %33, %34 : vector<1x128xf32>
    %c0_26 = arith.constant 0 : index
    %c0_27 = arith.constant 0 : index
    %36 = vector.load %arg12[%c0_26, %c0_27] : memref<1x128xf32, #tpu.memory_space<vmem>>, vector<1x128xf32>
    tpu.vector_store %arg12[%c0_26, %c0_27], %35 {strides = array<i32>} : memref<1x128xf32, #tpu.memory_space<vmem>>, vector<1x128xf32>,
    return
  }
  func.func @transform_0(%arg0: i32) -> (i32, i32) {
    %c0_i32 = arith.constant 0 : i32
    %c0_i32_0 = arith.constant 0 : i32
    return %c0_i32, %arg0 : i32, i32
  }
  func.func @transform_1(%arg0: i32) -> (i32, i32) {
    %c0_i32 = arith.constant 0 : i32
    %c0_i32_0 = arith.constant 0 : i32
    %c0_i32_1 = arith.constant 0 : i32
    return %c0_i32, %c0_i32_0 : i32, i32
  }
  func.func @transform_2(%arg0: i32) -> (i32, i32) {
    %c0_i32 = arith.constant 0 : i32
    %c0_i32_0 = arith.constant 0 : i32
    %c0_i32_1 = arith.constant 0 : i32
    return %c0_i32, %c0_i32_0 : i32, i32
  }
  func.func @transform_3(%arg0: i32) -> (i32, i32) {
    %c0_i32 = arith.constant 0 : i32
    %c0_i32_0 = arith.constant 0 : i32
    %c0_i32_1 = arith.constant 0 : i32
    return %c0_i32, %c0_i32_0 : i32, i32
  }
  func.func @transform_4(%arg0: i32) -> (i32, i32) {
    %c0_i32 = arith.constant 0 : i32
    %c0_i32_0 = arith.constant 0 : i32
    %c0_i32_1 = arith.constant 0 : i32
    return %c0_i32, %c0_i32_0 : i32, i32
  }
  func.func @transform_5(%arg0: i32) -> (i32, i32) {
    %c0_i32 = arith.constant 0 : i32
    %c0_i32_0 = arith.constant 0 : i32
    %c0_i32_1 = arith.constant 0 : i32
    return %c0_i32, %c0_i32_0 : i32, i32
  }
  func.func @transform_6(%arg0: i32) -> (i32, i32) {
    %c0_i32 = arith.constant 0 : i32
    %c0_i32_0 = arith.constant 0 : i32
    %c0_i32_1 = arith.constant 0 : i32
    return %c0_i32, %c0_i32_0 : i32, i32
  }
  func.func @transform_7(%arg0: i32) -> (i32, i32) {
    %c0_i32 = arith.constant 0 : i32
    %c0_i32_0 = arith.constant 0 : i32
    %c0_i32_1 = arith.constant 0 : i32
    return %c0_i32, %c0_i32_0 : i32, i32
  }
  func.func @transform_8(%arg0: i32) -> (i32, i32) {
    %c0_i32 = arith.constant 0 : i32
    %c0_i32_0 = arith.constant 0 : i32
    %c0_i32_1 = arith.constant 0 : i32
    return %c0_i32, %c0_i32_0 : i32, i32
  }
  func.func @transform_9(%arg0: i32) -> (i32, i32) {
    %c0_i32 = arith.constant 0 : i32
    %c0_i32_0 = arith.constant 0 : i32
    %c0_i32_1 = arith.constant 0 : i32
    return %c0_i32, %c0_i32_0 : i32, i32
  }
  func.func @transform_10(%arg0: i32) -> (i32, i32) {
    %c0_i32 = arith.constant 0 : i32
    %c0_i32_0 = arith.constant 0 : i32
    %c0_i32_1 = arith.constant 0 : i32
    return %c0_i32, %c0_i32_0 : i32, i32
  }
  func.func @transform_11(%arg0: i32) -> (i32, i32) {
    %c0_i32 = arith.constant 0 : i32
    %c0_i32_0 = arith.constant 0 : i32
    return %c0_i32, %arg0 : i32, i32
  }
}

</mosaic_0001>

<bundles_post_ra>
// kernel: tpu_custom_call.1
= control target key start
LH: loop header
LB: loop body
LE: loop exit
PB: predicated region body
PF: predicated region fallthrough
CT: control target
= control target key end

     0   :  { %s1279_s0 = inlined_call_operand.vmem [shape: f32[8,128], index: 0, kind: input, shape index: {}]   ;;  %s1280_s1 = inlined_call_operand.vmem [shape: f32[96,8], index: 1, kind: input, shape index: {}]   ;;  %s1281_s2 = inlined_call_operand.vmem [shape: f32[96,1], index: 2, kind: input, shape index: {}]   ;;  %s1282_s3 = inlined_call_operand.vmem [shape: f32[48,96], index: 3, kind: input, shape index: {}]   ;;  %s1283_s4 = inlined_call_operand.vmem [shape: f32[48,1], index: 4, kind: input, shape index: {}]   ;;  %s1284_s5 = inlined_call_operand.vmem [shape: f32[24,48], index: 5, kind: input, shape index: {}]   ;;  %s1285_s6 = inlined_call_operand.vmem [shape: f32[24,1], index: 6, kind: input, shape index: {}]   ;;  %s1286_s7 = inlined_call_operand.vmem [shape: f32[12,24], index: 7, kind: input, shape index: {}]   ;;  %s1287_s8 = inlined_call_operand.vmem [shape: f32[12,1], index: 8, kind: input, shape index: {}]   ;;  %s1288_s9 = inlined_call_operand.vmem [shape: f32[1,12], index: 9, kind: input, shape index: {}]   ;;  %s1289_s10 = inlined_call_operand.<no memory space> [shape: f32[1,1], index: 10, kind: input, shape index: {}]   ;;  %s1290_s11 = inlined_call_operand.hbm [shape: f32[1,128], index: 11, kind: output, shape index: {}]  }
   0x1   :  { %v16_v0 = vstv %s1289_s10 }
   0x2   :  { %17 = vst [vmem:[#allocation2] sm:$0x1] %v16_v0 }
   0x3   :  { %v41_v1 = vld [vmem:[%s1279_s0] sm:$0xff]  ;;  %vm127_vm0 = vcmask 64512   ;;  %v1029_v3 = vmov 0   ;;  %v66_v4 = vld [vmem:[%s1281_s2 + $0x58] sm:$0xff]  ;;  %v64_v5 = vld [vmem:[%s1281_s2 + $0x48] sm:$0xff] }
   0x4   :  { %v43_v2 = vld [vmem:[%s1280_s1] sm:$0xff]  ;;  %955 = vtanh.f32 %v41_v1  ;;  %953 = vset.pattern.permute.xlu0 %v1029_v3  ;;  %954 = vset.pattern.permute.xlu1 %v1029_v3  ;;  %v65_v6 = vld [vmem:[%s1281_s2 + $0x50] sm:$0xff]  ;;  %v62_v8 = vld [vmem:[%s1281_s2 + $0x38] sm:$0xff] }
   0x5   :  { %861 = vmatprep.mubr.msk.f32.mxu0 %vm127_vm0, %v43_v2  ;;  %124 = vperm.xlu0 %953, %v66_v4   ;;  %v63_v7 = vld [vmem:[%s1281_s2 + $0x40] sm:$0xff]  ;;  %v61_v9 = vld [vmem:[%s1281_s2 + $0x30] sm:$0xff] }
   0x6   :  { %114 = vperm.xlu1 %954, %v64_v5  }
   0x9   :  { %119 = vperm.xlu0 %953, %v65_v6  }
   0xa   :  { %109 = vperm.xlu1 %954, %v63_v7  }
   0xb   :  { %18 = vsyncpa [#allocation4], 0  ;;  %v44_v11 = vld [vmem:[%s1280_s1 + $0x8] sm:$0xff]  ;;  %v45_v13 = vld [vmem:[%s1280_s1 + $0x10] sm:$0xff]  ;;  %vm343_vm1 = vcmask 785408   ;;  %vm1031_vm2 = vmmov 0  }
   0xc   :  { %v60_v12 = vld [vmem:[%s1281_s2 + $0x28] sm:$0xff]  ;;  %v59_v14 = vld [vmem:[%s1281_s2 + $0x20] sm:$0xff]  ;;  %v46_v15 = vld [vmem:[%s1280_s1 + $0x18] sm:$0xff]  ;;  %vm484_vm3 = vcmask 392192   ;;  %vm591_vm4 = vcmask 195584   ;;  %vm690_vm5 = vcmask 1043456  }
   0xd   :  { %104 = vperm.xlu0 %953, %v62_v8   ;;  %v58_v16 = vld [vmem:[%s1281_s2 + $0x18] sm:$0xff]  ;;  %v47_v17 = vld [vmem:[%s1280_s1 + $0x20] sm:$0xff]  ;;  %v57_v18 = vld [vmem:[%s1281_s2 + $0x10] sm:$0xff]  ;;  %vm686_vm6 = vcmask 97280  }
   0xe   :  { %99 = vperm.xlu1 %954, %v61_v9   ;;  %v48_v19 = vld [vmem:[%s1280_s1 + $0x28] sm:$0xff]  ;;  %v49_v21 = vld [vmem:[%s1280_s1 + $0x30] sm:$0xff]  ;;  %v55_v22 = vld [vmem:[%s1281_s2] sm:$0xff] }
   0xf   :  { %v56_v20 = vld [vmem:[%s1281_s2 + $0x8] sm:$0xff]  ;;  %v50_v23 = vld [vmem:[%s1280_s1 + $0x38] sm:$0xff]  ;;  %v51_v25 = vld [vmem:[%s1280_s1 + $0x40] sm:$0xff] }
  0x10   :  { %v312_v24 = vld [vmem:[%s1283_s4 + $0x28] sm:$0xff]  ;;  %v311_v26 = vld [vmem:[%s1283_s4 + $0x20] sm:$0xff]  ;;  %v310_v28 = vld [vmem:[%s1283_s4 + $0x18] sm:$0xff] }
  0x11   :  { %v956_v10 = vpop.eup %955  ;;  %94 = vperm.xlu0 %953, %v60_v12   ;;  %v52_v27 = vld [vmem:[%s1280_s1 + $0x48] sm:$0xff]  ;;  %v53_v29 = vld [vmem:[%s1280_s1 + $0x50] sm:$0xff]  ;;  %v54_v31 = vld [vmem:[%s1280_s1 + $0x58] sm:$0xff] }
  0x12   :  { %859 = vmatprep.subr.mxu0 %v956_v10  ;;  %89 = vperm.xlu1 %954, %v59_v14   ;;  %v309_v30 = vld [vmem:[%s1283_s4 + $0x10] sm:$0xff]  ;;  %v308_v32 = vld [vmem:[%s1283_s4 + $0x8] sm:$0xff]  ;;  %v307_v33 = vld [vmem:[%s1283_s4] sm:$0xff] }
  0x13   :  { %860 = vmatpush3.msra.mxu0 %v956_v10  ;;  %v468_v34 = vld [vmem:[%s1285_s6 + $0x10] sm:$0xff]  ;;  %v467_v35 = vld [vmem:[%s1285_s6 + $0x8] sm:$0xff]  ;;  %v466_v36 = vld [vmem:[%s1285_s6] sm:$0xff] }
  0x14   :  { %862 = vmatmul.mubr.msk.f32.vlgmr.msra.gmra.mxu0 %vm127_vm0, %v44_v11  ;;  %v580_v37 = vld [vmem:[%s1287_s8 + $0x8] sm:$0xf]  ;;  %v579_v38 = vld [vmem:[%s1287_s8] sm:$0xff] }
  0x15   :  { %864 = vmatprep.mubr.msk.f32.mxu0 %vm127_vm0, %v45_v13  ;;  %84 = vperm.xlu0 %953, %v58_v16   ;;  %v676_v39 = vld [vmem:[#allocation2] sm:$0x1] }
  0x16   :  { %79 = vperm.xlu1 %954, %v57_v18   ;;  %v301_v40 = vld [vmem:[%s1282_s3] sm:$0xff] }
  0x17   :  { %903 = vmatprep.mubr.msk.f32.mxu1 %vm343_vm1, %v301_v40 }
  0x18   :  { %865 = vmatmul.mubr.msk.f32.gmra.mxu0 %vm127_vm0, %v46_v15 }
  0x19   :  { %867 = vmatprep.mubr.msk.f32.mxu0 %vm127_vm0, %v47_v17  ;;  %74 = vperm.xlu0 %953, %v56_v20  }
  0x1a   :  { %69 = vperm.xlu1 %954, %v55_v22  }
  0x1c   :  { %868 = vmatmul.mubr.msk.f32.gmra.mxu0 %vm127_vm0, %v48_v19 }
  0x1d   :  { %870 = vmatprep.mubr.msk.f32.mxu0 %vm127_vm0, %v49_v21  ;;  %340 = vperm.xlu0 %953, %v312_v24  }
  0x1e   :  { %335 = vperm.xlu1 %954, %v311_v26   ;;  %v303_v26 = vld [vmem:[%s1282_s3 + $0x10] sm:$0xff] }
  0x20   :  { %871 = vmatmul.mubr.msk.f32.gmra.mxu0 %vm127_vm0, %v50_v23 }
  0x21   :  { %873 = vmatprep.mubr.msk.f32.mxu0 %vm127_vm0, %v51_v25  ;;  %330 = vperm.xlu0 %953, %v310_v28   ;;  %v302_v25 = vld [vmem:[%s1282_s3 + $0x8] sm:$0xff]  ;;  %v305_v28 = vld [vmem:[%s1282_s3 + $0x20] sm:$0xff] }
  0x22   :  { %325 = vperm.xlu1 %954, %v309_v30   ;;  %v1030_v30 = vmov 0.0  }
  0x23   :  { %912 = vmatprep.subr.mxu0 %v1030_v30 }
  0x24   :  { %874 = vmatmul.mubr.msk.f32.gmra.mxu0 %vm127_vm0, %v52_v27  ;;  %v304_v27 = vld [vmem:[%s1282_s3 + $0x18] sm:$0xff] }
  0x25   :  { %876 = vmatprep.mubr.msk.f32.mxu0 %vm127_vm0, %v53_v29  ;;  %320 = vperm.xlu0 %953, %v308_v32   ;;  %v306_v29 = vld [vmem:[%s1282_s3 + $0x28] sm:$0xff] }
  0x26   :  { %315 = vperm.xlu1 %954, %v307_v33  }
  0x28   :  { %877 = vmatmul.mubr.msk.f32.gmra.mxu0 %vm127_vm0, %v54_v31 }
  0x29   :  { %481 = vperm.xlu0 %953, %v468_v34   ;;  %924 = vmatprep.mubr.msk.f32.mxu0 %vm1031_vm2, %v1030_v30 }
  0x2a   :  { %476 = vperm.xlu1 %954, %v467_v35  }
  0x2d   :  { %471 = vperm.xlu0 %953, %v466_v36  }
  0x2e   :  { %588 = vperm.xlu1 %954, %v580_v37  }
  0x31   :  { %583 = vperm.xlu0 %953, %v579_v38  }
  0x32   :  { %679 = vperm.xlu1 %954, %v676_v39  }
  0x80   :  { %v125_v45 = vpop.permute.xlu0 %124 }
  0x81   :  { %v115_v47 = vpop.permute.xlu1 %114 }
  0x84   :  { %v120_v50 = vpop.permute.xlu0 %119 }
  0x85   :  { %v110_v52 = vpop.permute.xlu1 %109 }
  0x88   :  { %v105_v55 = vpop.permute.xlu0 %104 }
  0x89   :  { %v100_v58 = vpop.permute.xlu1 %99 }
  0x8c   :  { %v95_v63 = vpop.permute.xlu0 %94 }
  0x8d   :  { %v90_v1 = vpop.permute.xlu1 %89 }
  0x90   :  { %v85_v4 = vpop.permute.xlu0 %84 }
  0x91   :  { %v80_v6 = vpop.permute.xlu1 %79 }
  0x94   :  { %v75_v11 = vpop.permute.xlu0 %74 }
  0x95   :  { %v70_v14 = vpop.permute.xlu1 %69 }
  0x98   :  { %v341_v32 = vpop.permute.xlu0 %340 }
  0x99   :  { %v336_v34 = vpop.permute.xlu1 %335 }
  0x9c   :  { %v331_v37 = vpop.permute.xlu0 %330 }
  0x9d   :  { %v326_v40 = vpop.permute.xlu1 %325 }
  0xd4   :  { %v863_v41 = vpop.f32.mrf.mxu0 }
  0xd5   :  { %v236_v12 = vadd.f32 %v863_v41, %v75_v11 }
  0xd6   :  { %v230_v42 = vpop.f32.mrf.mxu0 }
  0xd7   :  { %v231_v15 = vadd.f32 %v230_v42, %v70_v14 }
  0xd8   :  { %v866_v43 = vpop.f32.mrf.mxu0 }
  0xd9   :  { %v246_v7 = vadd.f32 %v866_v43, %v85_v4 }
  0xda   :  { %v240_v44 = vpop.f32.mrf.mxu0 }
  0xdb   :  { %v241_v9 = vadd.f32 %v240_v44, %v80_v6 }
  0xdc   :  { %v869_v46 = vpop.f32.mrf.mxu0 }
  0xdd   :  { %v256_v3 = vadd.f32 %v869_v46, %v95_v63 }
  0xde   :  { %v250_v48 = vpop.f32.mrf.mxu0 }
  0xdf   :  { %v251_v5 = vadd.f32 %v250_v48, %v90_v1 }
  0xe0   :  { %v872_v49 = vpop.f32.mrf.mxu0 }
  0xe1   :  { %v266_v0 = vadd.f32 %v872_v49, %v105_v55 }
  0xe2   :  { %v260_v51 = vpop.f32.mrf.mxu0 }
  0xe3   :  { %v261_v2 = vadd.f32 %v260_v51, %v100_v58  ;;  %v577_v58 = vld [vmem:[%s1286_s7] sm:$0xff] }
  0xe4   :  { %v875_v53 = vpop.f32.mrf.mxu0 }
  0xe5   :  { %v276_v60 = vadd.f32 %v875_v53, %v115_v47  ;;  %v316_v47 = vpop.permute.xlu1 %315 }
  0xe6   :  { %v270_v54 = vpop.f32.mrf.mxu0 }
  0xe7   :  { %v271_v62 = vadd.f32 %v270_v54, %v110_v52  ;;  %v463_v54 = vld [vmem:[%s1284_s5] sm:$0xff] }
  0xe8   :  { %v878_v56 = vpop.f32.mrf.mxu0 }
  0xe9   :  { %v286_v57 = vadd.f32 %v878_v56, %v125_v45  ;;  %v321_v45 = vpop.permute.xlu0 %320  ;;  %v464_v56 = vld [vmem:[%s1284_s5 + $0x8] sm:$0xff] }
  0xea   :  { %v280_v59 = vpop.f32.mrf.mxu0 }
  0xeb   :  { %957 = vtanh.f32 %v286_v57  ;;  %v281_v61 = vadd.f32 %v280_v59, %v120_v50  ;;  %v465_v57 = vld [vmem:[%s1284_s5 + $0x10] sm:$0xff] }
  0xed   :  { %959 = vtanh.f32 %v281_v61  ;;  %v482_v61 = vpop.permute.xlu0 %481 }
  0xee   :  { %961 = vtanh.f32 %v276_v60 }
  0xef   :  { %963 = vtanh.f32 %v271_v62 }
  0xf0   :  { %965 = vtanh.f32 %v266_v0  ;;  %v477_v0 = vpop.permute.xlu1 %476 }
  0xf1   :  { %967 = vtanh.f32 %v261_v2  ;;  %v472_v4 = vpop.permute.xlu0 %471 }
  0xf2   :  { %969 = vtanh.f32 %v256_v3 }
  0xf3   :  { %971 = vtanh.f32 %v251_v5 }
  0xf4   :  { %973 = vtanh.f32 %v246_v7  ;;  %v589_v11 = vpop.permute.xlu1 %588 }
  0xf5   :  { %975 = vtanh.f32 %v241_v9  ;;  %v584_v14 = vpop.permute.xlu0 %583 }
  0xf6   :  { %977 = vtanh.f32 %v236_v12 }
  0xf7   :  { %979 = vtanh.f32 %v231_v15 }
  0xf8   :  { %v958_v8 = vpop.eup %957 }
  0xf9   :  { %879 = vmatprep.subr.mxu1 %v958_v8 }
  0xfa   :  { %v960_v10 = vpop.eup %959  ;;  %880 = vmatpush3.msra.mxu1 %v958_v8 }
  0xfb   :  { %881 = vmatprep.subr.mxu1 %v960_v10  ;;  %v962_v13 = vpop.eup %961 }
  0xfc   :  { %882 = vmatpush3.msra.mxu1 %v960_v10  ;;  %v964_v16 = vpop.eup %963  ;;  %v578_v10 = vld [vmem:[%s1286_s7 + $0x8] sm:$0xf]  ;;  %s1032_s7 = smov [#allocation3]  }
  0xfd   :  { %883 = vmatprep.subr.mxu1 %v962_v13  ;;  %v966_v17 = vpop.eup %965 }
  0xfe   :  { %884 = vmatpush3.msra.mxu1 %v962_v13  ;;  %v968_v18 = vpop.eup %967 }
  0xff   :  { %885 = vmatprep.subr.mxu1 %v964_v16  ;;  %v970_v19 = vpop.eup %969 }
 0x100   :  { %886 = vmatpush3.msra.mxu1 %v964_v16  ;;  %v972_v20 = vpop.eup %971 }
 0x101   :  { %887 = vmatprep.subr.mxu1 %v966_v17  ;;  %v974_v21 = vpop.eup %973 }
 0x102   :  { %888 = vmatpush3.msra.mxu1 %v966_v17  ;;  %v976_v22 = vpop.eup %975 }
 0x103   :  { %889 = vmatprep.subr.mxu1 %v968_v18  ;;  %v978_v23 = vpop.eup %977 }
 0x104   :  { %890 = vmatpush3.msra.mxu1 %v968_v18  ;;  %v980_v24 = vpop.eup %979  ;;  %v675_v18 = vld [vmem:[%s1288_s9] sm:$0x1]  ;;  %s777_s9 = sshll.u32 %s1032_s7, 4  ;;  %s778_s9 = int_to_ptr.vmem [resolvable:$true] %s777_s9 }
 0x105   :  { %891 = vmatprep.subr.mxu1 %v970_v19  ;;  %s1007_s22 = scalar_lea.vmem %s778_s9, 16  ;;  %s1011_s4 = scalar_lea.vmem %s778_s9, 32 }
 0x106   :  { %892 = vmatpush3.msra.mxu1 %v970_v19  ;;  %p1008_p0 = scmp.ne.s32.totalorder %s778_s9, %s1007_s22  ;;  %p1012_p1 = scmp.lt.s32.totalorder %s778_s9, %s778_s9 }
 0x107   :  { %893 = vmatprep.subr.mxu1 %v972_v20  ;;  %p1013_p2 = scmp.lt.s32.totalorder %s1011_s4, %s1007_s22 }
 0x108   :  { %894 = vmatpush3.msra.mxu1 %v972_v20  ;;  %v682_v20 = vlaneseq }
 0x109   :  { %895 = vmatprep.subr.mxu1 %v974_v21  ;;  %p1014_p3 = por %p1013_p2, %p1012_p1 }
 0x10a   :  { %896 = vmatpush3.msra.mxu1 %v974_v21  ;;  %v683_v21 = vshrl.u32 %v682_v20, 7 }
 0x10b   :  { %897 = vmatprep.subr.mxu1 %v976_v22  ;;  %p1015_p4 = pnand %p1014_p3, %p1008_p0 }
 0x10c   :  { %898 = vmatpush3.msra.mxu1 %v976_v22  ;;  %v684_v22 = vsub.s32 0, %v683_v21 }
 0x10d   :  { %899 = vmatprep.subr.mxu1 %v978_v23 }
 0x10e   :  { %900 = vmatpush3.msra.mxu1 %v978_v23  ;;  %v680_v23 = vpop.permute.xlu1 %679 }
 0x10f   :  { %901 = vmatprep.subr.mxu1 %v980_v24 }
 0x110   :  { %902 = vmatpush3.msra.mxu1 %v980_v24  ;;  %v685_v24 = vrot.slane %v680_v23, %v684_v22 }
 0x111   :  { %904 = vmatmul.mubr.msk.f32.vlgmr.msra.gmra.mxu1 %vm343_vm1, %v302_v25 }
 0x112   :  { %906 = vmatprep.mubr.msk.f32.mxu1 %vm343_vm1, %v303_v26 }
 0x115   :  { %907 = vmatmul.mubr.msk.f32.gmra.mxu1 %vm343_vm1, %v304_v27 }
 0x116   :  { %909 = vmatprep.mubr.msk.f32.mxu1 %vm343_vm1, %v305_v28 }
 0x119   :  { %910 = vmatmul.mubr.msk.f32.gmra.mxu1 %vm343_vm1, %v306_v29 }
 0x11a   :  { %939 = vmatprep.mubr.msk.f32.mxu1 %vm591_vm4, %v577_v58 }
 0x1d1   :  { %v905_v31 = vpop.f32.mrf.mxu1 }
 0x1d2   :  { %v434_v46 = vadd.f32 %v905_v31, %v321_v45 }
 0x1d3   :  { %v428_v33 = vpop.f32.mrf.mxu1 }
 0x1d4   :  { %v429_v48 = vadd.f32 %v428_v33, %v316_v47 }
 0x1d5   :  { %v908_v35 = vpop.f32.mrf.mxu1 }
 0x1d6   :  { %v444_v42 = vadd.f32 %v908_v35, %v331_v37 }
 0x1d7   :  { %v438_v36 = vpop.f32.mrf.mxu1 }
 0x1d8   :  { %v439_v44 = vadd.f32 %v438_v36, %v326_v40 }
 0x1d9   :  { %v911_v38 = vpop.f32.mrf.mxu1 }
 0x1da   :  { %v454_v39 = vadd.f32 %v911_v38, %v341_v32 }
 0x1db   :  { %v448_v41 = vpop.f32.mrf.mxu1 }
 0x1dc   :  { %981 = vtanh.f32 %v454_v39  ;;  %v449_v43 = vadd.f32 %v448_v41, %v336_v34 }
 0x1de   :  { %983 = vtanh.f32 %v449_v43 }
 0x1df   :  { %985 = vtanh.f32 %v444_v42 }
 0x1e0   :  { %987 = vtanh.f32 %v439_v44 }
 0x1e1   :  { %989 = vtanh.f32 %v434_v46 }
 0x1e2   :  { %991 = vtanh.f32 %v429_v48 }
 0x1e9   :  { %v982_v49 = vpop.eup %981 }
 0x1ea   :  { %913 = vmatpush3.msra.mxu0 %v982_v49 }
 0x1eb   :  { %v984_v50 = vpop.eup %983  ;;  %914 = vmatprep.subr.mxu0 %v1030_v30 }
 0x1ec   :  { %915 = vmatpush3.msra.mxu0 %v984_v50  ;;  %v986_v51 = vpop.eup %985 }
 0x1ed   :  { %916 = vmatprep.subr.mxu0 %v1030_v30  ;;  %v988_v52 = vpop.eup %987 }
 0x1ee   :  { %917 = vmatpush3.msra.mxu0 %v986_v51  ;;  %v990_v53 = vpop.eup %989 }
 0x1ef   :  { %918 = vmatprep.subr.mxu0 %v1030_v30  ;;  %v992_v55 = vpop.eup %991 }
 0x1f0   :  { %919 = vmatpush3.msra.mxu0 %v988_v52 }
 0x1f1   :  { %920 = vmatprep.subr.mxu0 %v1030_v30 }
 0x1f2   :  { %921 = vmatpush3.msra.mxu0 %v990_v53 }
 0x1f3   :  { %922 = vmatprep.subr.mxu0 %v1030_v30 }
 0x1f4   :  { %923 = vmatpush3.msra.mxu0 %v992_v55 }
 0x1f5   :  { %925 = vmatmul.mubr.msk.f32.vlgmr.msra.gmra.mxu0 %vm484_vm3, %v463_v54  ;;  %942 = vmatprep.subr.mxu0 %v1030_v30 }
 0x1f6   :  { %927 = vmatprep.mubr.msk.f32.mxu0 %vm1031_vm2, %v1030_v30 }
 0x1f9   :  { %928 = vmatmul.mubr.msk.f32.gmra.mxu0 %vm484_vm3, %v464_v56 }
 0x1fa   :  { %930 = vmatprep.mubr.msk.f32.mxu0 %vm1031_vm2, %v1030_v30 }
 0x1fd   :  { %931 = vmatmul.mubr.msk.f32.gmra.mxu0 %vm484_vm3, %v465_v57 }
 0x1fe   :  { %946 = vmatprep.mubr.msk.f32.mxu0 %vm1031_vm2, %v1030_v30 }
 0x2b5   :  { %v560_v59 = vpop.f32.mrf.mxu0 }
 0x2b6   :  { %v561_v6 = vadd.f32 %v560_v59, %v472_v4 }
 0x2b7   :  { %v926_v60 = vpop.f32.mrf.mxu0 }
 0x2b9   :  { %v565_v62 = vpop.f32.mrf.mxu0 }
 0x2ba   :  { %v566_v2 = vadd.f32 %v565_v62, %v477_v0 }
 0x2bb   :  { %v929_v63 = vpop.f32.mrf.mxu0 }
 0x2bd   :  { %v570_v1 = vpop.f32.mrf.mxu0 }
 0x2be   :  { %v571_v3 = vadd.f32 %v570_v1, %v482_v61 }
 0x2bf   :  { %v932_v5 = vpop.f32.mrf.mxu0 }
 0x2c0   :  { %993 = vtanh.f32 %v571_v3 }
 0x2c1   :  { %995 = vtanh.f32 %v566_v2 }
 0x2c2   :  { %997 = vtanh.f32 %v561_v6 }
 0x2cd   :  { %v994_v7 = vpop.eup %993 }
 0x2ce   :  { %933 = vmatprep.subr.mxu1 %v994_v7  ;;  %v996_v8 = vpop.eup %995 }
 0x2cf   :  { %934 = vmatpush3.msra.mxu1 %v994_v7  ;;  %v998_v9 = vpop.eup %997 }
 0x2d0   :  { %935 = vmatprep.subr.mxu1 %v996_v8 }
 0x2d1   :  { %936 = vmatpush3.msra.mxu1 %v996_v8 }
 0x2d2   :  { %937 = vmatprep.subr.mxu1 %v998_v9 }
 0x2d3   :  { %938 = vmatpush3.msra.mxu1 %v998_v9 }
 0x2d4   :  { %940 = vmatmul.mubr.msk.f32.vlgmr.msra.gmra.mxu1 %vm591_vm4, %v578_v10 }
 0x394   :  { %v941_v12 = vpop.f32.mrf.mxu1 }
 0x395   :  { %v670_v13 = vadd.f32 %v941_v12, %v589_v11 }
 0x396   :  { %v664_v15 = vpop.f32.mrf.mxu1 }
 0x397   :  { %999 = vtanh.f32 %v670_v13  ;;  %v665_v16 = vadd.f32 %v664_v15, %v584_v14 }
 0x399   :  { %1001 = vtanh.f32 %v665_v16 }
 0x3a4   :  { %v1000_v17 = vpop.eup %999 }
 0x3a5   :  { %943 = vmatpush3.msk.msra.mxu0 %vm690_vm5, %v1000_v17 }
 0x3a6   :  { %v1002_v19 = vpop.eup %1001  ;;  %944 = vmatprep.subr.mxu0 %v1030_v30 }
 0x3a7   :  { %945 = vmatpush3.msra.mxu0 %v1002_v19 }
 0x3a8   :  { %947 = vmatmul.mubr.msk.f32.vlgmr.msra.gmra.mxu0 %vm686_vm6, %v675_v18 }
 0x468   :  { %v760_v25 = vpop.f32.mrf.mxu0 }
 0x469   :  { %v761_v26 = vadd.f32 %v760_v25, %v685_v24 }
 0x46a   :  { %v948_v27 = vpop.f32.mrf.mxu0 }
 0x46b   :  { %v810_v28 = vmul.f32 -1.442695, %v761_v26 }
 0x46d   :  { %1003 = vpow2.f32 %v810_v28 }
 0x47a   :  { %v1004_v29 = vpop.eup %1003 }
 0x47b   :  { %v767_v31 = vadd.f32 1.0, %v1004_v29 }
 0x47d   :  { %1005 = vrcp.f32 %v767_v31 }
 0x48a   :  { %v1006_v32 = vpop.eup %1005 }
 0x48b   :  { %770 = vst [vmem:[#allocation3] sm:$0x1] %v1006_v32 }
 0x48c   :  { %1018 = shalt.err (!%p1015_p4)
}
 0x48d   :  { %780 = dma.vmem_to_hbm [thread:$0]  %s778_s9, 16, %s1290_s11, [#allocation4]  }
 0x48e   :  { %1027 = dma.done.wait [#allocation4], 16  }
 0x48f   :  { %1028 = vsyncadd [#allocation4], 4294967280 }
 0x490   :  { %784 = vsyncpa [#allocation4], 1 }

</bundles_post_ra>
